<compile_context>
chip_gen: v5e
topology: v5e:2x2
jax: 0.10.0
libtpu: 0.0.40
codegen_flags: <defaults>
</compile_context>

<pallas_src>
import functools
import math

import jax
import jax.numpy as jnp
from jax.experimental import pallas as pl
from jax.experimental.pallas import tpu as pltpu

MIN_NORM = 1e-15
PROJ_EPS_F32 = 4e-3  # PoincareBall.eps[torch.float32]


def _round_up(v, m):
    return ((v + m - 1) // m) * m


def _artanh(x):
    # torch: x.clamp(-1 + 1e-15, 1 - 1e-15); 0.5 * (log(1+x) - log(1-x))
    x = jnp.clip(x, -1.0 + 1e-15, 1.0 - 1e-15)
    return 0.5 * (jnp.log1p(x) - jnp.log1p(-x))


# --------------------------------------------------------------------------- #
# Kernel                                                                      #
# --------------------------------------------------------------------------- #
def _hyp_linear_kernel(x_ref, w_ref, hb_ref, y2_ref, o_ref, *, c, use_bias):
    sqrt_c = math.sqrt(c)
    maxnorm = (1.0 - PROJ_EPS_F32) / sqrt_c

    xv = x_ref[...]                                          # (tm, Din_p), native dtype
    x_f = xv.astype(jnp.float32)
    x_sq = jnp.sum(x_f * x_f, axis=-1, keepdims=True)        # reduction #1 (over Din_p)
    x_norm = jnp.maximum(jnp.sqrt(x_sq), MIN_NORM)

    # ---- mobius_matvec(W, x, c): bf16 MXU inputs, f32 accumulation ----------
    mx = jnp.dot(xv.astype(jnp.bfloat16), w_ref[...],
                 preferred_element_type=jnp.float32)          # (tm, Dout_p) f32

    mx_sq = jnp.sum(mx * mx, axis=-1, keepdims=True)          # reduction #2 (over Dout_p)
    mx_norm = jnp.maximum(jnp.sqrt(mx_sq), MIN_NORM)

    ratio = mx_norm * pl.reciprocal(x_norm, approx=True)
    scale = (jnp.tanh(ratio * _artanh(sqrt_c * x_norm))
             * pl.reciprocal(mx_norm * sqrt_c, approx=True))  # (tm, 1), >= 0
    nz = mx_sq > 0.0                                          # all-zero-row check reuses mx_sq
    res = jnp.where(nz, scale * mx, 0.0)

    # ---- proj #1: ||res|| = scale * ||mx|| (scalar algebra, no reduction) ---
    res_norm = jnp.where(nz, scale * mx_norm, 0.0)
    over = res_norm > maxnorm
    inv_rn = pl.reciprocal(jnp.maximum(res_norm, MIN_NORM), approx=True)
    res = jnp.where(over, res * (maxnorm * inv_rn), res)
    res_norm = jnp.where(over, maxnorm, res_norm)             # derived post-proj norm

    if use_bias:
        hb = hb_ref[...].astype(jnp.float32)                  # (1, Dout_p), pre-projected
        y2 = y2_ref[0]                                        # ||hb||^2, row/tile-invariant

        # ---- mobius_add(res, hb, c) -----------------------------------------
        x2 = res_norm * res_norm                              # (tm, 1), no reduction
        xy = jnp.sum(res * hb, axis=-1, keepdims=True)        # reduction #3 (over Dout_p)
        a = 1.0 + 2.0 * c * xy + c * y2
        b = 1.0 - c * x2
        denom = jnp.maximum(1.0 + 2.0 * c * xy + (c * c) * x2 * y2, MIN_NORM)
        inv_d = pl.reciprocal(denom, approx=True)
        res = (a * res + b * hb) * inv_d

        # ---- proj #2: ||num||^2 = a^2*x2 + 2ab*xy + b^2*y2 (no reduction) ----
        num_sq = jnp.maximum(a * a * x2 + 2.0 * a * b * xy + b * b * y2, 0.0)
        r_norm = jnp.maximum(jnp.sqrt(num_sq) * inv_d, MIN_NORM)
        res = jnp.where(r_norm > maxnorm,
                        res * (maxnorm * pl.reciprocal(r_norm, approx=True)),
                        res)

    o_ref[...] = res.astype(o_ref.dtype)


# --------------------------------------------------------------------------- #
# Parameter preparation (hoist out of the per-call path)                      #
# --------------------------------------------------------------------------- #
def _hyp_bias(bias, c):
    """proj(expmap0(proj_tan0(bias, c), c), c) on the PoincareBall (plain JAX, exact)."""
    sqrt_c = math.sqrt(c)
    b = bias.reshape(1, -1).astype(jnp.float32)
    b_norm = jnp.maximum(jnp.sqrt(jnp.sum(b * b, axis=-1, keepdims=True)), MIN_NORM)
    hb = jnp.tanh(sqrt_c * b_norm) * b / (sqrt_c * b_norm)
    norm = jnp.maximum(jnp.sqrt(jnp.sum(hb * hb, axis=-1, keepdims=True)), MIN_NORM)
    maxnorm = (1.0 - PROJ_EPS_F32) / sqrt_c
    return jnp.where(norm > maxnorm, hb / norm * maxnorm, hb)


def prepare_hyp_linear(weight, bias, c, *, use_bias=True):
    """One-time parameter prep: bf16 (Din_p, Dout_p) weight, padded hb, y2 scalar."""
    dout, din = weight.shape
    din_p = _round_up(din, 128)
    dout_p = _round_up(dout, 128)

    w_bf = weight.astype(jnp.bfloat16).T                      # (Din, Dout), cast-then-transpose
    if (din_p, dout_p) != (din, dout):
        w_t = jnp.zeros((din_p, dout_p), jnp.bfloat16).at[:din, :dout].set(w_bf)
    else:
        w_t = w_bf

    hb = _hyp_bias(bias, c) if use_bias else jnp.zeros((1, dout), jnp.float32)
    y2 = jnp.sum(hb * hb, axis=-1).astype(jnp.float32)        # (1,) -> SMEM scalar
    if dout_p != dout:
        hb_p = jnp.zeros((1, dout_p), jnp.float32).at[:, :dout].set(hb)
    else:
        hb_p = hb

    return dict(w_t=w_t, hb=hb_p, y2=y2,
                din=din, dout=dout, din_p=din_p, dout_p=dout_p)


# --------------------------------------------------------------------------- #
# Wrapper                                                                     #
# --------------------------------------------------------------------------- #
def _vmem_budget_bytes():
    phys = None
    try:
        info = pltpu.get_tpu_info()
        for attr in ("vmem_capacity_bytes", "vmem_bytes", "vmem_size_bytes"):
            v = getattr(info, attr, None)
            if v:
                phys = int(v)
                break
    except Exception:
        phys = None
    if not phys:
        phys = 64 << 20                      # v7x-safe fallback
    return (phys // 8) * 7                   # leave headroom (112 MiB on v5e/v6e, 56 MiB on v7x)


def _choose_tm(n_rows, block_rows):
    block_rows = max(8, _round_up(int(block_rows), 8))
    # Keep >= 2 row-grid steps when possible so ("parallel",) can use both v7x TCs.
    cap = min(block_rows, max(8, _round_up(-(-n_rows // 2), 8)))
    tm = 8
    t = 16
    while t <= cap:
        padded = -(-n_rows // t) * t
        if padded - n_rows <= max(n_rows // 10, 7):   # <=~10% wasted rows in last tile
            tm = t
        t *= 2
    return tm


def hyp_linear(x, weight, bias, c, *, use_bias=True, block_rows=512, prepared=None):
    """x: (N, Din); weight: (Dout, Din) [PyTorch layout]; bias: (Dout,) -> (N, Dout)."""
    n_rows, din = x.shape
    if prepared is None:
        prepared = prepare_hyp_linear(weight, bias, c, use_bias=use_bias)
    assert prepared["din"] == din, "prepared weight does not match x"
    dout, din_p, dout_p = prepared["dout"], prepared["din_p"], prepared["dout_p"]

    x_bytes = jnp.dtype(x.dtype).itemsize
    out_bytes = x_bytes

    tm = _choose_tm(n_rows, block_rows)

    # VMEM accounting: single-buffered weight/hb + double-buffered x/out tiles
    # + f32/bf16 kernel intermediates.  Shrink tm until it fits the budget.
    budget = _vmem_budget_bytes()
    fixed = din_p * dout_p * 2 + dout_p * 4 + 1024
    per_row = (2 * din_p * x_bytes + 2 * dout_p * out_bytes   # pipelined I/O tiles
               + 6 * din_p                                    # x f32 + bf16 copies
               + 16 * dout_p)                                 # mx / res / num / temporaries
    while tm > 8 and fixed + tm * per_row > budget:
        tm = max(8, (tm // 2 // 8) * 8)
    # TODO(synk): if fixed + 8*per_row still exceeds the budget (huge Din*Dout,
    # esp. v7x 64 MiB VMEM), add a Din grid axis marked "arbitrary" with an f32
    # accumulator scratch (K-tiling) instead of keeping the full weight resident.

    grid = (-(-n_rows // tm),)               # cdiv; last tile is clipped, rows never padded

    # Lane-dense feature padding only when needed; skip the copy when aligned.
    x_in = x if din_p == din else jnp.zeros((n_rows, din_p), x.dtype).at[:, :din].set(x)

    vmem_limit = int(min(max((fixed + tm * per_row) * 5 // 4 + (8 << 20), 32 << 20), budget))

    kernel = functools.partial(_hyp_linear_kernel, c=float(c), use_bias=use_bias)

    out = pl.pallas_call(
        kernel,
        out_shape=jax.ShapeDtypeStruct((n_rows, dout_p), x.dtype),
        grid_spec=pltpu.PrefetchScalarGridSpec(
            num_scalar_prefetch=0,
            grid=grid,
            in_specs=[
                pl.BlockSpec((tm, din_p), lambda i: (i, 0)),                 # x row tile
                pl.BlockSpec(memory_space=pltpu.MemorySpace.VMEM),           # weight (single copy)
                pl.BlockSpec(memory_space=pltpu.MemorySpace.VMEM),           # hyperbolic bias
                pl.BlockSpec(memory_space=pltpu.MemorySpace.SMEM),           # y2 = ||hb||^2
            ],
            out_specs=pl.BlockSpec((tm, dout_p), lambda i: (i, 0)),
        ),
        compiler_params=pltpu.CompilerParams(
            dimension_semantics=("parallel",),
            vmem_limit_bytes=vmem_limit),
    )(x_in, prepared["w_t"], prepared["hb"], prepared["y2"])

    if dout_p != dout:
        out = out[:, :dout]                   # no slice at all when Dout is 128-aligned
    return out


# --------------------------------------------------------------------------- #
# Pure-JAX reference (f32, exact divides) for validation                      #
# --------------------------------------------------------------------------- #
def _proj_ref(x, sqrt_c):
    norm = jnp.maximum(jnp.sqrt(jnp.sum(x * x, axis=-1, keepdims=True)), MIN_NORM)
    maxnorm = (1.0 - PROJ_EPS_F32) / sqrt_c
    return jnp.where(norm > maxnorm, x / norm * maxnorm, x)


def _hyp_linear_ref(x, weight, bias, c, use_bias=True):
    sqrt_c = math.sqrt(c)
    x = x.astype(jnp.float32)
    w = weight.astype(jnp.float32)
    x_norm = jnp.maximum(jnp.sqrt(jnp.sum(x * x, -1, keepdims=True)), MIN_NORM)
    mx = x @ w.T
    mx_norm = jnp.maximum(jnp.sqrt(jnp.sum(mx * mx, -1, keepdims=True)), MIN_NORM)
    res_c = (jnp.tanh(mx_norm / x_norm * _artanh(sqrt_c * x_norm))
             * mx / (mx_norm * sqrt_c))
    mv = jnp.where(jnp.all(mx == 0.0, axis=-1, keepdims=True), 0.0, res_c)
    res = _proj_ref(mv, sqrt_c)
    if use_bias:
        hb = _hyp_bias(bias, c)
        x2 = jnp.sum(res * res, -1, keepdims=True)
        y2 = jnp.sum(hb * hb, -1, keepdims=True)
        xy = jnp.sum(res * hb, -1, keepdims=True)
        num = (1.0 + 2.0 * c * xy + c * y2) * res + (1.0 - c * x2) * hb
        denom = jnp.maximum(1.0 + 2.0 * c * xy + c * c * x2 * y2, MIN_NORM)
        res = _proj_ref(num / denom, sqrt_c)
    return res


def _xavier_uniform(key, out_f, in_f, gain):
    bound = gain * math.sqrt(6.0 / (in_f + out_f))
    return jax.random.uniform(key, (out_f, in_f), jnp.float32, -bound, bound)


if __name__ == "__main__":
    key = jax.random.PRNGKey(0)
    k_x, k_w, k_x2 = jax.random.split(key, 3)

    N, IN_F, OUT_F = 16, 32, 32
    C = 1.0

    # Parameters per reset_parameters(): xavier_uniform_(gain=sqrt(2)), bias = 0.
    weight = _xavier_uniform(k_w, OUT_F, IN_F, gain=math.sqrt(2.0))
    bias = jnp.zeros((OUT_F,), jnp.float32)

    # Input points inside the Poincare ball (small norm so artanh stays finite).
    x = 0.1 * jax.random.normal(k_x, (N, IN_F), jnp.float32)

    # Hoisted parameter prep (transpose / bf16 cast / pad done once).
    prepared = prepare_hyp_linear(weight, bias, C, use_bias=True)

    out = hyp_linear(x, weight, bias, C, use_bias=True, prepared=prepared)
    out = jax.block_until_ready(out)
    ref = _hyp_linear_ref(x, weight, bias, C, use_bias=True)

    assert out.shape == (N, OUT_F)
    assert bool(jnp.all(jnp.isfinite(out)))
    # Loose tolerance: bf16 MXU inputs + approx reciprocal vs. f32 reference.
    assert bool(jnp.allclose(out, ref, rtol=5e-2, atol=5e-3))

    # Ragged-N path: no row padding, cdiv grid with a clipped last tile.
    x_r = 0.1 * jax.random.normal(k_x2, (13, IN_F), jnp.float32)
    out_r = jax.block_until_ready(
        hyp_linear(x_r, weight, bias, C, use_bias=True, prepared=prepared))
    ref_r = _hyp_linear_ref(x_r, weight, bias, C, use_bias=True)
    assert out_r.shape == (13, OUT_F)
    assert bool(jnp.all(jnp.isfinite(out_r)))
    assert bool(jnp.allclose(out_r, ref_r, rtol=5e-2, atol=5e-3))

    print("KERNEL_OK")
</pallas_src>

<mosaic_0001>
module attributes {stable_mosaic.version = 11 : i64} {
  func.func @_hyp_linear_kernel(%arg0: i32, %arg1: memref<8x128xf32, #tpu.memory_space<vmem>>, %arg2: memref<128x128xbf16, #tpu.memory_space<vmem>>, %arg3: memref<1x128xf32, #tpu.memory_space<vmem>>, %arg4: memref<1xf32, #tpu.memory_space<smem>>, %arg5: memref<8x128xf32, #tpu.memory_space<vmem>>) attributes {dimension_semantics = [#tpu.dimension_semantics<parallel>], iteration_bounds = array<i64: 2>, scalar_prefetch = 0 : i64, scratch_operands = 0 : i64, tpu.core_type = #tpu.core_type<tc>, window_params = [{transform_indices = @transform_0, window_bounds = array<i64: 8, 128>}, {pipeline_mode = #tpu.pipeline_mode<synchronous>, transform_indices = @transform_1, window_bounds = array<i64: 128, 128>}, {pipeline_mode = #tpu.pipeline_mode<synchronous>, transform_indices = @transform_2, window_bounds = array<i64: 1, 128>}, {transform_indices = @transform_3, window_bounds = array<i64: 1>}, {transform_indices = @transform_4, window_bounds = array<i64: 8, 128>}]} {
    %c0 = arith.constant 0 : index
    %c0_0 = arith.constant 0 : index
    %0 = vector.load %arg1[%c0, %c0_0] : memref<8x128xf32, #tpu.memory_space<vmem>>, vector<8x128xf32>
    %1 = arith.mulf %0, %0 : vector<8x128xf32>
    %cst = arith.constant dense<0.000000e+00> : vector<8xf32>
    %2 = vector.multi_reduction <add>, %1, %cst [1] : vector<8x128xf32> to vector<8xf32>
    %3 = vector.shape_cast %2 : vector<8xf32> to vector<8x1xf32>
    %4 = math.sqrt %3 : vector<8x1xf32>
    %cst_1 = arith.constant 1.000000e-15 : f32
    %5 = vector.broadcast %cst_1 : f32 to vector<8x1xf32>
    %6 = arith.maximumf %4, %5 : vector<8x1xf32>
    %7 = arith.truncf %0 : vector<8x128xf32> to vector<8x128xbf16>
    %c0_2 = arith.constant 0 : index
    %c0_3 = arith.constant 0 : index
    %8 = vector.load %arg2[%c0_2, %c0_3] : memref<128x128xbf16, #tpu.memory_space<vmem>>, vector<128x128xbf16>
    %cst_4 = arith.constant dense<0.000000e+00> : vector<8x128xf32>
    %9 = tpu.matmul %7, %8, %cst_4 {dimension_numbers = #tpu.dot_dimension_numbers<[1], [0], [0], [1], [0, 0, 1, 1], [], []>} : vector<8x128xbf16>, vector<128x128xbf16>, vector<8x128xf32> -> vector<8x128xf32>
    %10 = arith.mulf %9, %9 : vector<8x128xf32>
    %cst_5 = arith.constant dense<0.000000e+00> : vector<8xf32>
    %11 = vector.multi_reduction <add>, %10, %cst_5 [1] : vector<8x128xf32> to vector<8xf32>
    %12 = vector.shape_cast %11 : vector<8xf32> to vector<8x1xf32>
    %13 = math.sqrt %12 : vector<8x1xf32>
    %cst_6 = arith.constant 1.000000e-15 : f32
    %14 = vector.broadcast %cst_6 : f32 to vector<8x1xf32>
    %15 = arith.maximumf %13, %14 : vector<8x1xf32>
    %16 = tpu.reciprocal %6 {approx = true} : vector<8x1xf32> -> vector<8x1xf32>
    %17 = arith.mulf %15, %16 : vector<8x1xf32>
    %cst_7 = arith.constant 1.000000e+00 : f32
    %18 = vector.broadcast %cst_7 : f32 to vector<8x1xf32>
    %19 = arith.mulf %18, %6 : vector<8x1xf32>
    %cst_8 = arith.constant -1.000000e+00 : f32
    %cst_9 = arith.constant 1.000000e+00 : f32
    %20 = vector.broadcast %cst_8 : f32 to vector<8x1xf32>
    %21 = arith.maximumf %20, %19 : vector<8x1xf32>
    %22 = vector.broadcast %cst_9 : f32 to vector<8x1xf32>
    %23 = arith.minimumf %22, %21 : vector<8x1xf32>
    %24 = math.log1p %23 : vector<8x1xf32>
    %cst_10 = arith.constant 0.000000e+00 : f32
    %25 = vector.broadcast %cst_10 : f32 to vector<8x1xf32>
    %26 = arith.subf %25, %23 : vector<8x1xf32>
    %27 = math.log1p %26 : vector<8x1xf32>
    %28 = arith.subf %24, %27 : vector<8x1xf32>
    %cst_11 = arith.constant 5.000000e-01 : f32
    %29 = vector.broadcast %cst_11 : f32 to vector<8x1xf32>
    %30 = arith.mulf %29, %28 : vector<8x1xf32>
    %31 = arith.mulf %17, %30 : vector<8x1xf32>
    %32 = math.tanh %31 : vector<8x1xf32>
    %cst_12 = arith.constant 1.000000e+00 : f32
    %33 = vector.broadcast %cst_12 : f32 to vector<8x1xf32>
    %34 = arith.mulf %15, %33 : vector<8x1xf32>
    %35 = tpu.reciprocal %34 {approx = true} : vector<8x1xf32> -> vector<8x1xf32>
    %36 = arith.mulf %32, %35 : vector<8x1xf32>
    %cst_13 = arith.constant 0.000000e+00 : f32
    %37 = vector.broadcast %cst_13 : f32 to vector<8x1xf32>
    %38 = arith.cmpf ogt, %12, %37 : vector<8x1xf32>
    %39 = vector.broadcast %36 : vector<8x1xf32> to vector<8x128xf32>
    %40 = arith.mulf %39, %9 : vector<8x128xf32>
    %cst_14 = arith.constant 0.000000e+00 : f32
    %41 = vector.shape_cast %38 : vector<8x1xi1> to vector<8x1xi1>
    %42 = vector.broadcast %41 : vector<8x1xi1> to vector<8x128xi1>
    %43 = vector.broadcast %cst_14 : f32 to vector<8x128xf32>
    %44 = arith.select %42, %40, %43 : vector<8x128xi1>, vector<8x128xf32>
    %45 = arith.mulf %36, %15 : vector<8x1xf32>
    %cst_15 = arith.constant 0.000000e+00 : f32
    %46 = vector.broadcast %cst_15 : f32 to vector<8x1xf32>
    %47 = arith.select %38, %45, %46 : vector<8x1xi1>, vector<8x1xf32>
    %cst_16 = arith.constant 0.995999991 : f32
    %48 = vector.broadcast %cst_16 : f32 to vector<8x1xf32>
    %49 = arith.cmpf ogt, %47, %48 : vector<8x1xf32>
    %cst_17 = arith.constant 1.000000e-15 : f32
    %50 = vector.broadcast %cst_17 : f32 to vector<8x1xf32>
    %51 = arith.maximumf %47, %50 : vector<8x1xf32>
    %52 = tpu.reciprocal %51 {approx = true} : vector<8x1xf32> -> vector<8x1xf32>
    %cst_18 = arith.constant 0.995999991 : f32
    %53 = vector.broadcast %cst_18 : f32 to vector<8x1xf32>
    %54 = arith.mulf %53, %52 : vector<8x1xf32>
    %55 = vector.broadcast %54 : vector<8x1xf32> to vector<8x128xf32>
    %56 = arith.mulf %44, %55 : vector<8x128xf32>
    %57 = vector.shape_cast %49 : vector<8x1xi1> to vector<8x1xi1>
    %58 = vector.broadcast %57 : vector<8x1xi1> to vector<8x128xi1>
    %59 = arith.select %58, %56, %44 : vector<8x128xi1>, vector<8x128xf32>
    %cst_19 = arith.constant 0.995999991 : f32
    %60 = vector.broadcast %cst_19 : f32 to vector<8x1xf32>
    %61 = arith.select %49, %60, %47 : vector<8x1xi1>, vector<8x1xf32>
    %c0_20 = arith.constant 0 : index
    %c0_21 = arith.constant 0 : index
    %62 = vector.load %arg3[%c0_20, %c0_21] : memref<1x128xf32, #tpu.memory_space<vmem>>, vector<1x128xf32>
    %c0_22 = arith.constant 0 : index
    %63 = memref.load %arg4[%c0_22] : memref<1xf32, #tpu.memory_space<smem>>
    %64 = arith.mulf %61, %61 : vector<8x1xf32>
    %65 = vector.broadcast %62 : vector<1x128xf32> to vector<8x128xf32>
    %66 = arith.mulf %59, %65 : vector<8x128xf32>
    %cst_23 = arith.constant dense<0.000000e+00> : vector<8xf32>
    %67 = vector.multi_reduction <add>, %66, %cst_23 [1] : vector<8x128xf32> to vector<8xf32>
    %68 = vector.shape_cast %67 : vector<8xf32> to vector<8x1xf32>
    %cst_24 = arith.constant 2.000000e+00 : f32
    %69 = vector.broadcast %cst_24 : f32 to vector<8x1xf32>
    %70 = arith.mulf %69, %68 : vector<8x1xf32>
    %cst_25 = arith.constant 1.000000e+00 : f32
    %71 = vector.broadcast %cst_25 : f32 to vector<8x1xf32>
    %72 = arith.addf %71, %70 : vector<8x1xf32>
    %cst_26 = arith.constant 1.000000e+00 : f32
    %73 = arith.mulf %cst_26, %63 : f32
    %74 = vector.broadcast %73 : f32 to vector<8x1xf32>
    %75 = arith.addf %72, %74 : vector<8x1xf32>
    %cst_27 = arith.constant 1.000000e+00 : f32
    %76 = vector.broadcast %cst_27 : f32 to vector<8x1xf32>
    %77 = arith.mulf %76, %64 : vector<8x1xf32>
    %cst_28 = arith.constant 1.000000e+00 : f32
    %78 = vector.broadcast %cst_28 : f32 to vector<8x1xf32>
    %79 = arith.subf %78, %77 : vector<8x1xf32>
    %cst_29 = arith.constant 2.000000e+00 : f32
    %80 = vector.broadcast %cst_29 : f32 to vector<8x1xf32>
    %81 = arith.mulf %80, %68 : vector<8x1xf32>
    %cst_30 = arith.constant 1.000000e+00 : f32
    %82 = vector.broadcast %cst_30 : f32 to vector<8x1xf32>
    %83 = arith.addf %82, %81 : vector<8x1xf32>
    %cst_31 = arith.constant 1.000000e+00 : f32
    %84 = vector.broadcast %cst_31 : f32 to vector<8x1xf32>
    %85 = arith.mulf %84, %64 : vector<8x1xf32>
    %86 = vector.broadcast %63 : f32 to vector<8x1xf32>
    %87 = arith.mulf %85, %86 : vector<8x1xf32>
    %88 = arith.addf %83, %87 : vector<8x1xf32>
    %cst_32 = arith.constant 1.000000e-15 : f32
    %89 = vector.broadcast %cst_32 : f32 to vector<8x1xf32>
    %90 = arith.maximumf %88, %89 : vector<8x1xf32>
    %91 = tpu.reciprocal %90 {approx = true} : vector<8x1xf32> -> vector<8x1xf32>
    %92 = vector.broadcast %75 : vector<8x1xf32> to vector<8x128xf32>
    %93 = arith.mulf %92, %59 : vector<8x128xf32>
    %94 = vector.broadcast %79 : vector<8x1xf32> to vector<8x128xf32>
    %95 = vector.broadcast %62 : vector<1x128xf32> to vector<8x128xf32>
    %96 = arith.mulf %94, %95 : vector<8x128xf32>
    %97 = arith.addf %93, %96 : vector<8x128xf32>
    %98 = vector.broadcast %91 : vector<8x1xf32> to vector<8x128xf32>
    %99 = arith.mulf %97, %98 : vector<8x128xf32>
    %100 = arith.mulf %75, %75 : vector<8x1xf32>
    %101 = arith.mulf %100, %64 : vector<8x1xf32>
    %cst_33 = arith.constant 2.000000e+00 : f32
    %102 = vector.broadcast %cst_33 : f32 to vector<8x1xf32>
    %103 = arith.mulf %102, %75 : vector<8x1xf32>
    %104 = arith.mulf %103, %79 : vector<8x1xf32>
    %105 = arith.mulf %104, %68 : vector<8x1xf32>
    %106 = arith.addf %101, %105 : vector<8x1xf32>
    %107 = arith.mulf %79, %79 : vector<8x1xf32>
    %108 = vector.broadcast %63 : f32 to vector<8x1xf32>
    %109 = arith.mulf %107, %108 : vector<8x1xf32>
    %110 = arith.addf %106, %109 : vector<8x1xf32>
    %cst_34 = arith.constant 0.000000e+00 : f32
    %111 = vector.broadcast %cst_34 : f32 to vector<8x1xf32>
    %112 = arith.maximumf %110, %111 : vector<8x1xf32>
    %113 = math.sqrt %112 : vector<8x1xf32>
    %114 = arith.mulf %113, %91 : vector<8x1xf32>
    %cst_35 = arith.constant 1.000000e-15 : f32
    %115 = vector.broadcast %cst_35 : f32 to vector<8x1xf32>
    %116 = arith.maximumf %114, %115 : vector<8x1xf32>
    %cst_36 = arith.constant 0.995999991 : f32
    %117 = vector.broadcast %cst_36 : f32 to vector<8x1xf32>
    %118 = arith.cmpf ogt, %116, %117 : vector<8x1xf32>
    %119 = tpu.reciprocal %116 {approx = true} : vector<8x1xf32> -> vector<8x1xf32>
    %cst_37 = arith.constant 0.995999991 : f32
    %120 = vector.broadcast %cst_37 : f32 to vector<8x1xf32>
    %121 = arith.mulf %120, %119 : vector<8x1xf32>
    %122 = vector.broadcast %121 : vector<8x1xf32> to vector<8x128xf32>
    %123 = arith.mulf %99, %122 : vector<8x128xf32>
    %124 = vector.shape_cast %118 : vector<8x1xi1> to vector<8x1xi1>
    %125 = vector.broadcast %124 : vector<8x1xi1> to vector<8x128xi1>
    %126 = arith.select %125, %123, %99 : vector<8x128xi1>, vector<8x128xf32>
    %c0_38 = arith.constant 0 : index
    %c0_39 = arith.constant 0 : index
    %127 = vector.load %arg5[%c0_38, %c0_39] : memref<8x128xf32, #tpu.memory_space<vmem>>, vector<8x128xf32>
    tpu.vector_store %arg5[%c0_38, %c0_39], %126 {strides = array<i32>} : memref<8x128xf32, #tpu.memory_space<vmem>>, vector<8x128xf32>,
    return
  }
  func.func @transform_0(%arg0: i32) -> (i32, i32) {
    %c0_i32 = arith.constant 0 : i32
    %c0_i32_0 = arith.constant 0 : i32
    return %arg0, %c0_i32 : i32, i32
  }
  func.func @transform_1(%arg0: i32) -> (i32, i32) {
    %c0_i32 = arith.constant 0 : i32
    %c0_i32_0 = arith.constant 0 : i32
    %c0_i32_1 = arith.constant 0 : i32
    return %c0_i32, %c0_i32_0 : i32, i32
  }
  func.func @transform_2(%arg0: i32) -> (i32, i32) {
    %c0_i32 = arith.constant 0 : i32
    %c0_i32_0 = arith.constant 0 : i32
    %c0_i32_1 = arith.constant 0 : i32
    return %c0_i32, %c0_i32_0 : i32, i32
  }
  func.func @transform_3(%arg0: i32) -> i32 {
    %c0_i32 = arith.constant 0 : i32
    %c0_i32_0 = arith.constant 0 : i32
    return %c0_i32 : i32
  }
  func.func @transform_4(%arg0: i32) -> (i32, i32) {
    %c0_i32 = arith.constant 0 : i32
    %c0_i32_0 = arith.constant 0 : i32
    return %arg0, %c0_i32 : i32, i32
  }
}

</mosaic_0001>

<bundles_post_ra>
// kernel: tpu_custom_call.1
= control target key start
LH: loop header
LB: loop body
LE: loop exit
PB: predicated region body
PF: predicated region fallthrough
CT: control target
= control target key end

     0   :  { %s987_s0 = inlined_call_operand.hbm [shape: f32[16,128], index: 0, kind: input, shape index: {}]   ;;  %s988_s1 = inlined_call_operand.hbm [shape: bf16[128,128], index: 1, kind: input, shape index: {}]   ;;  %s989_s2 = inlined_call_operand.vmem [shape: f32[1,128], index: 2, kind: input, shape index: {}]   ;;  %s990_s3 = inlined_call_operand.<no memory space> [shape: f32[1], index: 3, kind: input, shape index: {}]   ;;  %s991_s4 = inlined_call_operand.hbm [shape: f32[16,128], index: 4, kind: output, shape index: {}]  }
   0x1   :  { %9 = sst [smem:[#allocation2]] %s990_s3 }
   0x2   :  { %10 = vsyncpa [#allocation4], 0 }
   0x3   :  { %12 = vsyncpa [#allocation4 + $0x1], 0 }
   0x4   :  { %13 = vsyncpa [#allocation7], 0 }
   0x5   :  { %14 = vsyncpa [#allocation5], 0 }
   0x6   :  { %16 = vsyncpa [#allocation5 + $0x1], 0  ;;  %s839_s17 = smov 0   ;;  %s841_s18 = smov 0  }
   0x7   :  { %s843_s19 = smov 0   ;;  %s845_s20 = smov 0  }
   0x8 LB: > { %s153_s22 = sshll.u32 %s988_s1, 4  ;;  %s863_s23 = sadd.s32 4294967295, %s806_s20   ;;  %s806_s20 = sphi %s845_s20, %s1001_s20   ;;  %s802_s19 = sphi %s843_s19, %s1000_s19   ;;  %s798_s18 = sphi %s841_s18, %s999_s18   ;;  %s794_s17 = sphi %s839_s17, %s998_s17   ;;  %s154_s22 = int_to_ptr.hbm [resolvable:$true] %s153_s22 }
   0x9   : > { %p540_p0 = scmp.ge.s32.totalorder %s806_s20, 1  ;;  %p43_p1 = scmp.eq.s32.totalorder %s863_s23, 0 }
   0xa   : > { %p142_p2 = scmp.lt.s32.totalorder %s806_s20, 3  ;;  %s808_s25 = smov [#allocation6]  }
   0xb   : > { %s155_s26 = sshll.u32 %s808_s25, 4  ;;  %s809_s27 = smov 64   ;;  %s156_s26 = int_to_ptr.vmem [resolvable:$true] %s155_s26 }
   0xc   : > { %p868_p3 = pnand %p540_p0, %p142_p2  ;;  %s810_s28 = smov 4  }
   0xd   : > { %s539_s29 = sadd.s32 4294967294, %s806_s20   ;;  %s879_s30 = sadd.s32 1, %s806_s20  }
   0xe   : > { %p602_p4 = pneg %p868_p3  ;;  %s29_s5 = sadd.s32 1, %s802_s19 }
   0xf   : > { %s26_s6 = ssub.s32 %s806_s20, %s879_s30  ;;  %p36_p7 = scmp.ne.s32.totalorder %s802_s19, %s798_s18 }
  0x10   : > { %p603_p6 = pnand %p602_p4, %p43_p1  ;;  %p27_p8 = scmp.eq.s32.totalorder %s26_s6, 0 }
  0x11   : > { %p37_p9 = scmp.eq.s32.totalorder %s806_s20, 0  ;;  %p42_p10 = scmp.ne.s32.totalorder %s798_s18, %s794_s17 }
  0x12   : > { %605 = dma.hbm_to_vmem [thread:$0]  (!%p603_p6), %s154_s22, 1024, %s156_s26, [#allocation7], %s809_s27, %s809_s27, %s810_s28  }
  0x13   : > { %p129_p11 = scmp.eq.s32.totalorder %s863_s23, 1  ;;  %p895_p12 = por %p43_p1, %p42_p10 }
  0x14   : > { %s891_s7 = scalar_select %p27_p8, %s802_s19, %s29_s5  }
  0x15   : > { %p899_p13 = por %p129_p11, %p36_p7  ;;  %p135_p0 = scmp.eq.s32.totalorder %s539_s29, 1 }
  0x16   : > { %p38_p2 = por %p37_p9, %p36_p7  ;;  %s175_s10 = sand.u32 1, %s802_s19  }
  0x17   : > { %p904_p4 = por %p135_p0, %p42_p10  ;;  %p615_p6 = scmp.lt.s32.totalorder %s806_s20, 2 }
  0x18   : > { %s543_s12 = sshll.u32 %s175_s10, 3  ;;  %s544_s13 = sshll.u32 %s806_s20, 3 }
  0x19   : > { %s183_s16 = scalar_lea.hbm %s987_s0, %s544_s13  ;;  %s179_s21 = scalar_lea.vmem [#allocation3], %s543_s12 }
  0x1a   : > { %s185_s3 = sshll.u32 %s183_s16, 4  ;;  %s187_s22 = sshll.u32 %s179_s21, 4  ;;  %s186_s3 = int_to_ptr.hbm [resolvable:$true] %s185_s3  ;;  %s188_s22 = int_to_ptr.vmem [resolvable:$true] %s187_s22 }
  0x1b   : > { %p913_p8 = pnand %p615_p6, %p38_p2  ;;  %s176_s26 = scalar_lea.sflag [#allocation4], %s175_s10 }
  0x1c   : > { %s706_s27 = sshra.s32 %s186_s3, 4  ;;  %s713_s6 = scalar_lea.hbm %s987_s0, 16  ;;  %s707_s27 = int_to_ptr.hbm [resolvable:$true] %s706_s27 }
  0x1d   : > { %s708_s28 = scalar_lea.hbm %s707_s27, 8  ;;  %p710_p9 = pneg %p913_p8 }
  0x1e   : > { %p709_p7 = scmp.ne.s32.totalorder %s707_s27, %s708_s28  ;;  %p714_p0 = scmp.lt.s32.totalorder %s707_s27, %s987_s0 }
  0x1f   : > { %p715_p2 = scmp.lt.s32.totalorder %s713_s6, %s708_s28 }
  0x20   : > { %p711_p10 = pnand %p710_p9, %p709_p7 }
  0x21   : > { %p716_p6 = por %p715_p2, %p714_p0 }
  0x22   : > { %p712_p11 = pneg %p711_p10 }
  0x24   : > { %p717_p5 = pnand %p716_p6, %p712_p11 }
  0x26   : > { %720 = shalt.err (!%p717_p5)
}
  0x27   : > { %609 = dma.hbm_to_vmem [thread:$0]  (!%p913_p8), %s186_s3, 128, %s188_s22, %s176_s26  }
  0x28   : > { %196 = sbr.rel (%p868_p3) target bundleno = 553 (0x229), region = 36  ;;  %s930_s10 = sand.u32 (!%p868_p3), 1, %s798_s18  }
  0x29   : > { %s546_s14 = sshll.u32 (!%p868_p3), %s930_s10, 3  ;;  %s199_s15 = scalar_lea.sflag (!%p868_p3), [#allocation4], %s930_s10 }
  0x2a   : > { %s202_s16 = scalar_lea.vmem (!%p868_p3), [#allocation3], %s546_s14 }
  0x2d   : > { %781 = dma.done.wait (%p895_p12), %s199_s15, 128  }
  0x2e   : > { %783 = vsyncadd (%p895_p12), %s199_s15, 4294967168 }
  0x2f   : > { %785 = dma.done.wait (%p43_p1), [#allocation7], 1024  }
  0x30   : > { %787 = vsyncadd (%p43_p1), [#allocation7], 4294966272  ;;  %v593_v0 = vld [vmem:[#allocation6 + $0x38] sm:$0xff]  ;;  %v592_v1 = vld [vmem:[#allocation6 + $0x30] sm:$0xff]  ;;  %s390_s3 = sld [smem:[#allocation2]]  ;;  %s583_s21 = sshll.u32 %s863_s23, 3 }
  0x31   : > { %315 = vmatpush.bf16.msra.mxu0 %v593_v0  ;;  %v233_v2 = vld [vmem:[%s202_s16] sm:$0xff]  ;;  %v591_v4 = vld [vmem:[#allocation6 + $0x28] sm:$0xff]  ;;  %v590_v5 = vld [vmem:[#allocation6 + $0x20] sm:$0xff]  ;;  %s454_s26 = scalar_lea.hbm %s991_s4, %s583_s21  ;;  %s232_s27 = scalar_lea.vmem [#allocation8], %s546_s14 }
  0x32   : > { %v234_v3 = vmul.f32 %v233_v2, %v233_v2  ;;  %v589_v6 = vld [vmem:[#allocation6 + $0x18] sm:$0xff]  ;;  %v588_v7 = vld [vmem:[#allocation6 + $0x10] sm:$0xff]  ;;  %v587_v8 = vld [vmem:[#allocation6 + $0x8] sm:$0xff]  ;;  %v250_v10 = vpack.c.bf16 %v233_v2, %v233_v2  ;;  %s456_s28 = sshll.u32 %s232_s27, 4  ;;  %s458_s29 = sshll.u32 %s454_s26, 4  ;;  %s457_s28 = int_to_ptr.vmem [resolvable:$true] %s456_s28  ;;  %s459_s29 = int_to_ptr.hbm [resolvable:$true] %s458_s29 }
  0x33   : > { %v586_v9 = vld [vmem:[#allocation6] sm:$0xff]  ;;  %s444_s5 = scalar_lea.sflag [#allocation5], %s930_s10  ;;  %s750_s6 = sshra.s32 %s459_s29, 4  ;;  %s751_s6 = int_to_ptr.hbm [resolvable:$true] %s750_s6 }
  0x34   : > { %235 = vadd.xlane.f32.xlu0 %v234_v3  ;;  %s752_s23 = scalar_lea.hbm %s751_s6, 8  ;;  %s756_s14 = scalar_lea.hbm %s991_s4, 16 }
  0x35   : > { %316 = vmatpush.bf16.msra.mxu0 %v592_v1  ;;  %p753_p1 = scmp.ne.s32.totalorder %s751_s6, %s752_s23  ;;  %p757_p12 = scmp.lt.s32.totalorder %s751_s6, %s991_s4 }
  0x36   : > { %p758_p8 = scmp.lt.s32.totalorder %s756_s14, %s752_s23 }
  0x37   : > { %p754_p3 = pnand %p753_p1, %p899_p13 }
  0x38   : > { %p759_p7 = por %p758_p8, %p757_p12 }
  0x39   : > { %317 = vmatpush.bf16.msra.mxu0 %v591_v4  ;;  %p755_p5 = pneg %p754_p3 }
  0x3b   : > { %p760_p9 = pnand %p759_p7, %p755_p5 }
  0x3d   : > { %318 = vmatpush.bf16.msra.mxu0 %v590_v5  ;;  %v653_v5 = vld [vmem:[%s989_s2] ss:$0 sm:$0xff] }
  0x41   : > { %319 = vmatpush.bf16.msra.mxu0 %v589_v6 }
  0x45   : > { %320 = vmatpush.bf16.msra.mxu0 %v588_v7 }
  0x49   : > { %321 = vmatpush.bf16.msra.mxu0 %v587_v8 }
  0x4d   : > { %322 = vmatpush.bf16.msra.mxu0 %v586_v9 }
  0x50   : > { %323 = vmatmul.bf16.vlgmr.msra.gmra.mxu0 %v250_v10 }
  0xa7   : > { %v236_v14 = vpop.xlane.xlu0 %235 }
  0xa8   : > { %654 = vrsqrt.f32 %v236_v14  ;;  %vm244_vm0 = vcmp.eq.f32.partialorder %v236_v14, inf  ;;  %v247_v22 = vand.u32 2147483648, %v236_v14  ;;  %vm246_vm1 = vcmp.eq.f32.partialorder %v236_v14, 0.0 }
  0xae   : > { %v655_v15 = vpop.eup %654 }
  0xaf   : > { %v238_v16 = vmul.f32 %v655_v15, %v236_v14 }
  0xb1   : > { %v239_v17 = vmul.f32 %v655_v15, %v238_v16  ;;  %v400_v16 = vstv %s390_s3 }
  0xb3   : > { %v240_v18 = vmul.f32 0.5, %v239_v17 }
  0xb5   : > { %v241_v19 = vsub.f32 1.5, %v240_v18 }
  0xb7   : > { %v242_v20 = vmul.f32 %v655_v15, %v241_v19 }
  0xb9   : > { %v243_v21 = vmul.f32 %v242_v20, %v236_v14 }
  0xbb   : > { %v245_v23 = vsel %vm244_vm0, %v236_v14, %v243_v21 }
  0xbc   : > { %v248_v24 = vsel %vm246_vm1, %v247_v22, %v245_v23 }
  0xbd   : > { %v249_v25 = vmax.f32 %v248_v24, 1e-15 }
  0xbf   : > { %v581_v26 = vclamps-f32 %v249_v25, 1.0 }
  0xc1   : > { %v357_v27 = vsub.f32 0.0, %v581_v26  ;;  %v348_v28 = vadd.f32 1.0, %v581_v26  ;;  %v351_v31 = vmul.f32 -0.5, %v581_v26  ;;  %v354_v40 = vand.u32 2147483647, %v581_v26 }
  0xc3   : > { %v358_v30 = vadd.f32 1.0, %v357_v27  ;;  %v361_v32 = vmul.f32 -0.5, %v357_v27  ;;  %v352_v36 = vadd.f32 1.0, %v351_v31  ;;  %v364_v41 = vand.u32 2147483647, %v357_v27 }
  0xc4   : > { %vm355_vm2 = vcmp.lt.f32.partialorder %v354_v40, 0.0004427343 }
  0xc5   : > { %v362_v37 = vadd.f32 1.0, %v361_v32  ;;  %v353_v44 = vmul.f32 %v581_v26, %v352_v36  ;;  %vm365_vm3 = vcmp.lt.f32.partialorder %v364_v41, 0.0004427343 }
  0xc7   : > { %v363_v46 = vmul.f32 %v362_v37, %v357_v27 }
  0xcd   : > { %v944_v11 = vpop.f32.mrf.mxu0 }
  0xce   : > { %v328_v12 = vmul.f32 %v944_v11, %v944_v11 }
  0xd0   : > { %329 = vadd.xlane.f32.xlu0 %v328_v12 }
  0xd5   : > { %v326_v13 = vpop.f32.mrf.mxu0 }
 0x143   : > { %v330_v29 = vpop.xlane.xlu0 %329 }
 0x144   : > { %656 = vrsqrt.f32 %v330_v29  ;;  %vm338_vm4 = vcmp.eq.f32.partialorder %v330_v29, inf  ;;  %v341_v52 = vand.u32 2147483648, %v330_v29  ;;  %vm340_vm5 = vcmp.eq.f32.partialorder %v330_v29, 0.0 }
 0x145   : > { %658 = vlog2.f32 %v348_v28  ;;  %vm373_vm6 = vcmp.gt.f32.partialorder %v330_v29, 0.0 }
 0x146   : > { %660 = vlog2.f32 %v358_v30 }
 0x147   : > { %662 = vrcp.f32 %v249_v25 }
 0x14a   : > { %v657_v33 = vpop.eup %656 }
 0x14b   : > { %v332_v34 = vmul.f32 %v657_v33, %v330_v29  ;;  %v659_v35 = vpop.eup %658 }
 0x14c   : > { %v661_v38 = vpop.eup %660  ;;  %v350_v43 = vmul.f32 0.6931472, %v659_v35 }
 0x14d   : > { %v333_v39 = vmul.f32 %v657_v33, %v332_v34  ;;  %v360_v45 = vmul.f32 0.6931472, %v661_v38  ;;  %v663_v57 = vpop.eup %662 }
 0x14e   : > { %v356_v49 = vsel %vm355_vm2, %v353_v44, %v350_v43 }
 0x14f   : > { %v334_v42 = vmul.f32 0.5, %v333_v39  ;;  %v366_v50 = vsel %vm365_vm3, %v363_v46, %v360_v45 }
 0x150   : > { %v367_v54 = vsub.f32 %v356_v49, %v366_v50 }
 0x151   : > { %v335_v47 = vsub.f32 1.5, %v334_v42 }
 0x152   : > { %v368_v59 = vmul.f32 0.5, %v367_v54 }
 0x153   : > { %v336_v48 = vmul.f32 %v657_v33, %v335_v47 }
 0x155   : > { %v337_v51 = vmul.f32 %v336_v48, %v330_v29 }
 0x157   : > { %v339_v53 = vsel %vm338_vm4, %v330_v29, %v337_v51 }
 0x158   : > { %v342_v55 = vsel %vm340_vm5, %v341_v52, %v339_v53 }
 0x159   : > { %v343_v56 = vmax.f32 %v342_v55, 1e-15 }
 0x15b   : > { %v345_v58 = vmul.f32 %v663_v57, %v343_v56  ;;  %664 = vrcp.f32 %v343_v56 }
 0x15d   : > { %v369_v60 = vmul.f32 %v368_v59, %v345_v58 }
 0x15f   : > { %666 = vtanh.f32 %v369_v60 }
 0x161   : > { %v665_v61 = vpop.eup %664 }
 0x165   : > { %v667_v62 = vpop.eup %666 }
 0x166   : > { %v372_v63 = vmul.f32 %v667_v62, %v665_v61 }
 0x168   : > { %v378_v0 = vmul.f32 %v372_v63, %v343_v56  ;;  %v374_v7 = vmul.f32 %v372_v63, %v944_v11 }
 0x16a   : > { %v379_v1 = vsel %vm373_vm6, %v378_v0, 0.0  ;;  %v377_v12 = vsel %vm373_vm6, %v374_v7, 0.0 }
 0x16b   : > { %vm380_vm7 = vcmp.gt.f32.partialorder %v379_v1, 0.996  ;;  %v381_v2 = vmax.f32 %v379_v1, 1e-15 }
 0x16c   : > { %v388_v3 = vsel %vm380_vm7, 0.996, %v379_v1 }
 0x16d   : > { %668 = vrcp.f32 %v381_v2  ;;  %v391_v4 = vmul.f32 %v388_v3, %v388_v3 }
 0x16f   : > { %v402_v6 = vsub.f32 1.0, %v391_v4  ;;  %v403_v19 = vmul.f32 %v400_v16, %v391_v4 }
 0x171   : > { %v408_v8 = vmul.f32 %v653_v5, %v402_v6  ;;  %v417_v11 = vmul.f32 %v402_v6, %v402_v6 }
 0x173   : > { %v669_v9 = vpop.eup %668  ;;  %v418_v30 = vmul.f32 %v417_v11, %v400_v16 }
 0x174   : > { %v383_v10 = vmul.f32 0.996, %v669_v9 }
 0x176   : > { %v384_v13 = vmul.f32 %v383_v10, %v377_v12 }
 0x178   : > { %v387_v14 = vsel %vm380_vm7, %v384_v13, %v377_v12 }
 0x179   : > { %v395_v15 = vmul.f32 %v653_v5, %v387_v14 }
 0x17b   : > { %396 = vadd.xlane.f32.xlu1 %v395_v15 }
 0x1ee   : > { %v397_v17 = vpop.xlane.xlu1 %396 }
 0x1ef   : > { %v398_v18 = vmul.f32 2.0, %v397_v17 }
 0x1f1   : > { %v399_v20 = vadd.f32 1.0, %v398_v18 }
 0x1f3   : > { %v401_v21 = vadd.f32 %v400_v16, %v399_v20  ;;  %v404_v22 = vadd.f32 %v403_v19, %v399_v20 }
 0x1f5   : > { %v405_v23 = vmax.f32 %v404_v22, 1e-15  ;;  %v411_v24 = vmul.f32 %v401_v21, %v401_v21  ;;  %v413_v25 = vmul.f32 2.0, %v401_v21  ;;  %v407_v27 = vmul.f32 %v401_v21, %v387_v14 }
 0x1f7   : > { %670 = vrcp.f32 %v405_v23  ;;  %v414_v26 = vmul.f32 %v413_v25, %v402_v6  ;;  %v412_v28 = vmul.f32 %v411_v24, %v391_v4  ;;  %v409_v32 = vadd.f32 %v408_v8, %v407_v27 }
 0x1f9   : > { %v415_v29 = vmul.f32 %v414_v26, %v397_v17 }
 0x1fb   : > { %v416_v31 = vadd.f32 %v415_v29, %v412_v28 }
 0x1fd   : > { %v671_v33 = vpop.eup %670  ;;  %v419_v34 = vadd.f32 %v418_v30, %v416_v31 }
 0x1fe   : > { %v410_v35 = vmul.f32 %v671_v33, %v409_v32 }
 0x1ff   : > { %v420_v36 = vmax.f32 %v419_v34, 0.0 }
 0x201   : > { %672 = vrsqrt.f32 %v420_v36  ;;  %vm428_vm8 = vcmp.eq.f32.partialorder %v420_v36, inf  ;;  %v431_v44 = vand.u32 2147483648, %v420_v36  ;;  %vm430_vm9 = vcmp.eq.f32.partialorder %v420_v36, 0.0 }
 0x207   : > { %v673_v37 = vpop.eup %672 }
 0x208   : > { %v422_v38 = vmul.f32 %v673_v37, %v420_v36 }
 0x20a   : > { %v423_v39 = vmul.f32 %v673_v37, %v422_v38 }
 0x20c   : > { %v424_v40 = vmul.f32 0.5, %v423_v39 }
 0x20e   : > { %v425_v41 = vsub.f32 1.5, %v424_v40 }
 0x210   : > { %v426_v42 = vmul.f32 %v673_v37, %v425_v41 }
 0x212   : > { %v427_v43 = vmul.f32 %v426_v42, %v420_v36 }
 0x214   : > { %v429_v45 = vsel %vm428_vm8, %v420_v36, %v427_v43 }
 0x215   : > { %v432_v46 = vsel %vm430_vm9, %v431_v44, %v429_v45 }
 0x216   : > { %v433_v47 = vmul.f32 %v671_v33, %v432_v46 }
 0x218   : > { %v434_v48 = vmax.f32 %v433_v47, 1e-15 }
 0x21a   : > { %674 = vrcp.f32 %v434_v48  ;;  %vm435_vm10 = vcmp.gt.f32.partialorder %v434_v48, 0.996 }
 0x220   : > { %v675_v49 = vpop.eup %674 }
 0x221   : > { %v437_v50 = vmul.f32 0.996, %v675_v49 }
 0x223   : > { %v438_v51 = vmul.f32 %v437_v50, %v410_v35 }
 0x225   : > { %v441_v52 = vsel %vm435_vm10, %v438_v51, %v410_v35 }
 0x226   : > { %442 = vst [vmem:[%s232_s27] sm:$0xff] %v441_v52 }
 0x227   : > { %763 = shalt.err (!%p760_p9)
}
 0x228   : > { %600 = dma.vmem_to_hbm [thread:$0]  (%p899_p13), %s457_s28, 128, %s459_s29, %s444_s5  }
 0x229 PF: > { %s470_s10 = sand.u32 1, %s794_s17   ;;  %p997_p10 = scmp.ge.s32.totalorder %s806_s20, 2 }
 0x22a   : > { %s471_s24 = scalar_lea.sflag [#allocation5], %s470_s10 }
 0x22b   : > { %p611_p11 = pnand %p997_p10, %p904_p4 }
 0x22d   : > { %p612_p0 = pneg %p611_p11 }
 0x22f   : > { %789 = dma.done.wait (%p612_p0), %s471_s24, 128  }
 0x230   : > { %791 = vsyncadd (%p612_p0), %s471_s24, 4294967168  ;;  %p19_p2 = scmp.ge.s32.totalorder %s879_s30, 4   ;;  %s998_s17 = smov %s798_s18 }
 0x231   : > { %s999_s18 = smov %s802_s19  ;;  %s1000_s19 = smov %s891_s7 }
 0x232   : > { %s1001_s20 = smov %s879_s30  ;;  %21 = sbr.rel (!%p19_p2) target bundleno = 8 (0x8), region = 85 }
 0x237   :  { %477 = vsyncpa [#allocation4], 1 }
 0x238   :  { %479 = vsyncpa [#allocation4 + $0x1], 1 }
 0x239   :  { %480 = vsyncpa [#allocation7], 1 }
 0x23a   :  { %481 = vsyncpa [#allocation5], 1 }
 0x23b   :  { %483 = vsyncpa [#allocation5 + $0x1], 1 }

</bundles_post_ra>
